<compile_context>
chip_gen: v5e
topology: v5e:2x2
jax: 0.10.0
libtpu: 0.0.40
codegen_flags: <defaults>
</compile_context>

<pallas_src>
import functools

import jax
import jax.numpy as jnp
from jax.experimental import pallas as pl
from jax.experimental.pallas import tpu as pltpu

STATE_DIM = 10
ACTION_DIM = 20
HIDDEN = 128

# Batch-tile cap, sized for v7x (64 MiB physical VMEM): padded per-row VMEM
# cost (x / h / logits / out all lane-pad to 128) is ~1.5 KB, so an 8192-row
# tile double-buffered plus f32 intermediates stays well under 48 MiB.
# On v5e / v6e (128 MiB VMEM) callers may raise tile_b_max to 16384.
TILE_B_MAX = 8192
VMEM_LIMIT_BYTES = 48 << 20


def actor_kernel(x_ref, w1_ref, b1_ref, w2_ref, b2_ref, out_ref):
    # x tile arrives as f32 (no wrapper-side cast/pad); cast to bf16 here.
    x = x_ref[...].astype(jnp.bfloat16)

    # fc1 (MXU, bf16 in / f32 acc) + bias + ReLU, elementwise in f32 (v5e-safe).
    h = jnp.dot(x, w1_ref[...], preferred_element_type=jnp.float32)
    h = jnp.maximum(h + b1_ref[...], 0.0)

    # fc2 (MXU, bf16 in / f32 acc) + bias in f32.
    logits = jnp.dot(h.astype(jnp.bfloat16), w2_ref[...],
                     preferred_element_type=jnp.float32)
    logits = logits + b2_ref[...]

    # Numerically stable softmax with EXACT normalization (kernel is
    # memory/overhead-bound, so the approx-EUP reciprocal saving is moot and
    # exact row sums matter for Categorical / log-prob consumers).
    m = jnp.max(logits, axis=-1, keepdims=True)
    e = jnp.exp(logits - m)
    probs = e / jnp.sum(e, axis=-1, keepdims=True)

    # Note: out last dim (20) < 128 lanes -> masked stores; if the output DMA
    # is still exposed in profiles, the next step is lane-dense packing of the
    # output slab in the wrapper (see perf review).
    out_ref[...] = probs.astype(out_ref.dtype)


def prepare_params(w1, b1, w2, b2):
    """One-time param prep (hoisted out of the per-call hot path).
    Expects w1:[10,128], w2:[128,20] (already transposed vs PyTorch),
    b1:[128] or [1,128], b2:[20] or [1,20]."""
    return (w1.astype(jnp.bfloat16),
            jnp.reshape(b1, (1, HIDDEN)).astype(jnp.float32),
            w2.astype(jnp.bfloat16),
            jnp.reshape(b2, (1, ACTION_DIM)).astype(jnp.float32))


def prepare_params_from_torch(w1_t, b1_t, w2_t, b2_t):
    """Convert PyTorch nn.Linear layout: W:(out,in) -> transpose, b:(out,)."""
    return prepare_params(jnp.asarray(w1_t).T, jnp.asarray(b1_t),
                          jnp.asarray(w2_t).T, jnp.asarray(b2_t))


@functools.partial(jax.jit,
                   static_argnames=("tile_b_max", "out_dtype", "core_parallel"))
def actor_forward(x, w1_bf, b1_f, w2_bf, b2_f, *,
                  tile_b_max=TILE_B_MAX,
                  out_dtype=jnp.bfloat16,
                  core_parallel=False):
    """x: [B, STATE_DIM] f32. Params as produced by prepare_params().
    Returns [B, ACTION_DIM] softmax probabilities in `out_dtype`."""
    B = x.shape[0]
    x = x.astype(jnp.float32)  # no-op if already f32

    # Batch tile: multiple of 8 sublanes, capped by tile_b_max.  The ragged
    # last tile is handled by the cdiv grid (Pallas masks the partial block),
    # so no wrapper-side padding pass over x.
    tile_b = min(tile_b_max, max(8, -(-B // 8) * 8))
    grid = (pl.cdiv(B, tile_b),)

    out_bytes = 2 if out_dtype == jnp.bfloat16 else 4
    cost = pl.CostEstimate(
        flops=2 * B * (STATE_DIM * HIDDEN + HIDDEN * ACTION_DIM),
        transcendentals=B * ACTION_DIM,
        bytes_accessed=(B * STATE_DIM * 4                 # f32 x in
                        + w1_bf.size * 2 + w2_bf.size * 2  # bf16 weights
                        + b1_f.size * 4 + b2_f.size * 4    # f32 biases
                        + B * ACTION_DIM * out_bytes),     # output
    )

    # v7x: "parallel" does not split the grid across the 2 TensorCores; use
    # CORE_PARALLEL there.  Default stays portable for v5e/v6e single-TC chips.
    batch_sem = pltpu.CORE_PARALLEL if core_parallel else "parallel"

    return pl.pallas_call(
        actor_kernel,
        out_shape=jax.ShapeDtypeStruct((B, ACTION_DIM), out_dtype),
        grid=grid,
        in_specs=[
            pl.BlockSpec((tile_b, STATE_DIM), lambda i: (i, 0)),   # x streamed
            pl.BlockSpec((STATE_DIM, HIDDEN), lambda i: (0, 0)),   # W1 resident
            pl.BlockSpec((1, HIDDEN), lambda i: (0, 0)),           # b1 resident
            pl.BlockSpec((HIDDEN, ACTION_DIM), lambda i: (0, 0)),  # W2 resident
            pl.BlockSpec((1, ACTION_DIM), lambda i: (0, 0)),       # b2 resident
        ],
        out_specs=pl.BlockSpec((tile_b, ACTION_DIM), lambda i: (i, 0)),
        compiler_params=pltpu.CompilerParams(
            dimension_semantics=(batch_sem,),
            vmem_limit_bytes=VMEM_LIMIT_BYTES,
        ),
        cost_estimate=cost,
    )(x, w1_bf, b1_f, w2_bf, b2_f)


def init_params(key):
    # Mirrors PyTorch nn.Linear default init: U(-1/sqrt(fan_in), 1/sqrt(fan_in)),
    # but already in the [in, out] layout the kernel expects.
    k1, k2, k3, k4 = jax.random.split(key, 4)
    bound1 = 1.0 / jnp.sqrt(STATE_DIM)
    bound2 = 1.0 / jnp.sqrt(HIDDEN)
    w1 = jax.random.uniform(k1, (STATE_DIM, HIDDEN), jnp.float32, -bound1, bound1)
    b1 = jax.random.uniform(k2, (HIDDEN,), jnp.float32, -bound1, bound1)
    w2 = jax.random.uniform(k3, (HIDDEN, ACTION_DIM), jnp.float32, -bound2, bound2)
    b2 = jax.random.uniform(k4, (ACTION_DIM,), jnp.float32, -bound2, bound2)
    return w1, b1, w2, b2


def ref_forward(x, w1, b1, w2, b2):
    # Pure-JAX reference matching the kernel's bf16-input / f32-accumulate dots.
    h = jnp.dot(x.astype(jnp.bfloat16), w1.astype(jnp.bfloat16),
                preferred_element_type=jnp.float32)
    h = jnp.maximum(h + b1, 0.0)
    logits = jnp.dot(h.astype(jnp.bfloat16), w2.astype(jnp.bfloat16),
                     preferred_element_type=jnp.float32) + b2
    return jax.nn.softmax(logits, axis=-1)


if __name__ == "__main__":
    key = jax.random.PRNGKey(0)
    pkey, xkey = jax.random.split(key)
    w1, b1, w2, b2 = init_params(pkey)
    params = prepare_params(w1, b1, w2, b2)   # one-time cast/reshape

    B = 16
    x = jax.random.normal(xkey, (B, STATE_DIM), jnp.float32)
    ref = ref_forward(x, w1, b1, w2, b2)

    # (1) Default fast path: bf16 output, single grid step.
    probs_bf = jax.block_until_ready(actor_forward(x, *params))
    assert probs_bf.shape == (B, ACTION_DIM)
    assert probs_bf.dtype == jnp.bfloat16
    probs_bf32 = probs_bf.astype(jnp.float32)
    assert jnp.allclose(jnp.sum(probs_bf32, axis=-1), 1.0, atol=2e-2)
    assert jnp.allclose(probs_bf32, ref, atol=1e-2)

    # (2) f32 output + tiny tile to exercise the multi-step pipelined grid.
    probs_f32 = jax.block_until_ready(
        actor_forward(x, *params, tile_b_max=8, out_dtype=jnp.float32))
    assert probs_f32.dtype == jnp.float32
    assert jnp.allclose(jnp.sum(probs_f32, axis=-1), 1.0, atol=1e-3)
    assert jnp.allclose(probs_f32, ref, atol=1e-3)

    print("KERNEL_OK")
</pallas_src>

<mosaic_0001>
module attributes {stable_mosaic.version = 11 : i64} {
  func.func @actor_kernel(%arg0: i32, %arg1: memref<16x10xf32, #tpu.memory_space<vmem>>, %arg2: memref<10x128xbf16, #tpu.memory_space<vmem>>, %arg3: memref<1x128xf32, #tpu.memory_space<vmem>>, %arg4: memref<128x20xbf16, #tpu.memory_space<vmem>>, %arg5: memref<1x20xf32, #tpu.memory_space<vmem>>, %arg6: memref<16x20xbf16, #tpu.memory_space<vmem>>) attributes {dimension_semantics = [#tpu.dimension_semantics<parallel>], iteration_bounds = array<i64: 1>, scalar_prefetch = 0 : i64, scratch_operands = 0 : i64, tpu.core_type = #tpu.core_type<tc>, window_params = [{transform_indices = @transform_0, window_bounds = array<i64: 16, 10>}, {pipeline_mode = #tpu.pipeline_mode<synchronous>, transform_indices = @transform_1, window_bounds = array<i64: 10, 128>}, {pipeline_mode = #tpu.pipeline_mode<synchronous>, transform_indices = @transform_2, window_bounds = array<i64: 1, 128>}, {pipeline_mode = #tpu.pipeline_mode<synchronous>, transform_indices = @transform_3, window_bounds = array<i64: 128, 20>}, {pipeline_mode = #tpu.pipeline_mode<synchronous>, transform_indices = @transform_4, window_bounds = array<i64: 1, 20>}, {transform_indices = @transform_5, window_bounds = array<i64: 16, 20>}]} {
    %c0 = arith.constant 0 : index
    %c0_0 = arith.constant 0 : index
    %0 = vector.load %arg1[%c0, %c0_0] : memref<16x10xf32, #tpu.memory_space<vmem>>, vector<16x10xf32>
    %1 = arith.truncf %0 : vector<16x10xf32> to vector<16x10xbf16>
    %c0_1 = arith.constant 0 : index
    %c0_2 = arith.constant 0 : index
    %2 = vector.load %arg2[%c0_1, %c0_2] : memref<10x128xbf16, #tpu.memory_space<vmem>>, vector<10x128xbf16>
    %cst = arith.constant dense<0.000000e+00> : vector<16x128xf32>
    %3 = tpu.matmul %1, %2, %cst {dimension_numbers = #tpu.dot_dimension_numbers<[1], [0], [0], [1], [0, 0, 1, 1], [], []>} : vector<16x10xbf16>, vector<10x128xbf16>, vector<16x128xf32> -> vector<16x128xf32>
    %c0_3 = arith.constant 0 : index
    %c0_4 = arith.constant 0 : index
    %4 = vector.load %arg3[%c0_3, %c0_4] : memref<1x128xf32, #tpu.memory_space<vmem>>, vector<1x128xf32>
    %5 = vector.broadcast %4 : vector<1x128xf32> to vector<16x128xf32>
    %6 = arith.addf %3, %5 : vector<16x128xf32>
    %cst_5 = arith.constant 0.000000e+00 : f32
    %7 = vector.broadcast %cst_5 : f32 to vector<16x128xf32>
    %8 = arith.maximumf %6, %7 : vector<16x128xf32>
    %9 = arith.truncf %8 : vector<16x128xf32> to vector<16x128xbf16>
    %c0_6 = arith.constant 0 : index
    %c0_7 = arith.constant 0 : index
    %10 = vector.load %arg4[%c0_6, %c0_7] : memref<128x20xbf16, #tpu.memory_space<vmem>>, vector<128x20xbf16>
    %cst_8 = arith.constant dense<0.000000e+00> : vector<16x20xf32>
    %11 = tpu.matmul %9, %10, %cst_8 {dimension_numbers = #tpu.dot_dimension_numbers<[1], [0], [0], [1], [0, 0, 1, 1], [], []>} : vector<16x128xbf16>, vector<128x20xbf16>, vector<16x20xf32> -> vector<16x20xf32>
    %c0_9 = arith.constant 0 : index
    %c0_10 = arith.constant 0 : index
    %12 = vector.load %arg5[%c0_9, %c0_10] : memref<1x20xf32, #tpu.memory_space<vmem>>, vector<1x20xf32>
    %13 = vector.broadcast %12 : vector<1x20xf32> to vector<16x20xf32>
    %14 = arith.addf %11, %13 : vector<16x20xf32>
    %cst_11 = arith.constant dense<0xFF800000> : vector<16xf32>
    %15 = vector.multi_reduction <maximumf>, %14, %cst_11 [1] : vector<16x20xf32> to vector<16xf32>
    %16 = vector.shape_cast %15 : vector<16xf32> to vector<16x1xf32>
    %17 = vector.broadcast %16 : vector<16x1xf32> to vector<16x20xf32>
    %18 = arith.subf %14, %17 : vector<16x20xf32>
    %19 = math.exp %18 : vector<16x20xf32>
    %cst_12 = arith.constant dense<0.000000e+00> : vector<16xf32>
    %20 = vector.multi_reduction <add>, %19, %cst_12 [1] : vector<16x20xf32> to vector<16xf32>
    %21 = vector.shape_cast %20 : vector<16xf32> to vector<16x1xf32>
    %22 = vector.broadcast %21 : vector<16x1xf32> to vector<16x20xf32>
    %23 = arith.divf %19, %22 : vector<16x20xf32>
    %24 = arith.truncf %23 : vector<16x20xf32> to vector<16x20xbf16>
    %c0_13 = arith.constant 0 : index
    %c0_14 = arith.constant 0 : index
    %25 = vector.load %arg6[%c0_13, %c0_14] : memref<16x20xbf16, #tpu.memory_space<vmem>>, vector<16x20xbf16>
    tpu.vector_store %arg6[%c0_13, %c0_14], %24 {strides = array<i32>} : memref<16x20xbf16, #tpu.memory_space<vmem>>, vector<16x20xbf16>,
    return
  }
  func.func @transform_0(%arg0: i32) -> (i32, i32) {
    %c0_i32 = arith.constant 0 : i32
    %c0_i32_0 = arith.constant 0 : i32
    return %arg0, %c0_i32 : i32, i32
  }
  func.func @transform_1(%arg0: i32) -> (i32, i32) {
    %c0_i32 = arith.constant 0 : i32
    %c0_i32_0 = arith.constant 0 : i32
    %c0_i32_1 = arith.constant 0 : i32
    return %c0_i32, %c0_i32_0 : i32, i32
  }
  func.func @transform_2(%arg0: i32) -> (i32, i32) {
    %c0_i32 = arith.constant 0 : i32
    %c0_i32_0 = arith.constant 0 : i32
    %c0_i32_1 = arith.constant 0 : i32
    return %c0_i32, %c0_i32_0 : i32, i32
  }
  func.func @transform_3(%arg0: i32) -> (i32, i32) {
    %c0_i32 = arith.constant 0 : i32
    %c0_i32_0 = arith.constant 0 : i32
    %c0_i32_1 = arith.constant 0 : i32
    return %c0_i32, %c0_i32_0 : i32, i32
  }
  func.func @transform_4(%arg0: i32) -> (i32, i32) {
    %c0_i32 = arith.constant 0 : i32
    %c0_i32_0 = arith.constant 0 : i32
    %c0_i32_1 = arith.constant 0 : i32
    return %c0_i32, %c0_i32_0 : i32, i32
  }
  func.func @transform_5(%arg0: i32) -> (i32, i32) {
    %c0_i32 = arith.constant 0 : i32
    %c0_i32_0 = arith.constant 0 : i32
    return %arg0, %c0_i32 : i32, i32
  }
}

</mosaic_0001>

<bundles_post_ra>
// kernel: actor_forward.1
= control target key start
LH: loop header
LB: loop body
LE: loop exit
PB: predicated region body
PF: predicated region fallthrough
CT: control target
= control target key end

     0   :  { %vm40_vm0 = vcmask 1044480   ;;  %vm36_vm1 = vcmask 80896   ;;  %s384_s0 = inlined_call_operand.vmem [shape: f32[16,10], index: 0, kind: input, shape index: {}]   ;;  %s385_s1 = inlined_call_operand.vmem [shape: bf16[10,128], index: 1, kind: input, shape index: {}]   ;;  %s386_s2 = inlined_call_operand.vmem [shape: f32[1,128], index: 2, kind: input, shape index: {}]   ;;  %s387_s3 = inlined_call_operand.vmem [shape: bf16[128,20], index: 3, kind: input, shape index: {}]   ;;  %s388_s4 = inlined_call_operand.vmem [shape: f32[1,20], index: 4, kind: input, shape index: {}]   ;;  %s389_s5 = inlined_call_operand.hbm [shape: bf16[16,20], index: 5, kind: output, shape index: {}]  }
   0x1   :  { %v217_v0 = vld [vmem:[%s385_s1] sm:$0xf]  ;;  %v252_v1 = vld [vmem:[%s385_s1] sm:$0x10]  ;;  %v23_v4 = vld [vmem:[%s384_s0 + $0x8] sm:$0xff] }
   0x2   :  { %v22_v2 = vld [vmem:[%s384_s0] sm:$0xff]  ;;  %v218_v3 = vor.u32 %v252_v1, %v217_v0  ;;  %v260_v5 = vld [vmem:[%s387_s3 + $0x38] sm:$0xff]  ;;  %v259_v8 = vld [vmem:[%s387_s3 + $0x30] sm:$0xff] }
   0x3   :  { %v24_v7 = vpack.c.bf16 %v23_v4, %v22_v2  ;;  %129 = vmatpush.bf16.msra.mxu1 %v260_v5 }
   0x4   :  { %v42_v6 = vsel %vm40_vm0, %v218_v3, 0 }
   0x5   :  { %51 = vmatpush.bf16.msra.mxu0 %v42_v6 }
   0x6   :  { %10 = vsyncpa [#allocation3], 0  ;;  %v258_v9 = vld [vmem:[%s387_s3 + $0x28] sm:$0xff]  ;;  %v257_v10 = vld [vmem:[%s387_s3 + $0x20] sm:$0xff]  ;;  %vm143_vm2 = vcmask 162816   ;;  %vm194_vm7 = vcmask 158720  }
   0x7   :  { %130 = vmatpush.bf16.msra.mxu1 %v259_v8  ;;  %v256_v11 = vld [vmem:[%s387_s3 + $0x18] sm:$0xff]  ;;  %v255_v12 = vld [vmem:[%s387_s3 + $0x10] sm:$0xff]  ;;  %v254_v13 = vld [vmem:[%s387_s3 + $0x8] sm:$0xff]  ;;  %s203_s20 = sshll.u32 %s389_s5, 4  ;;  %s301_s21 = smov 64   ;;  %s204_s20 = int_to_ptr.hbm [resolvable:$true] %s203_s20 }
   0x8   :  { %219 = vmatmul.msk.bf16.vlgmr.msra.gmra.mxu0 %vm36_vm1, %v24_v7  ;;  %v253_v14 = vld [vmem:[%s387_s3] sm:$0xff]  ;;  %s302_s22 = smov 4  }
   0x9   :  { %v264_v16 = vld [vmem:[%s386_s2] ss:$0 sm:$0xff]  ;;  %s300_s2 = smov [#allocation2]  }
   0xa   :  { %v265_v23 = vld [vmem:[%s388_s4] ss:$0 sm:$0xff]  ;;  %s201_s3 = sshll.u32 %s300_s2, 4  ;;  %s202_s3 = int_to_ptr.vmem [resolvable:$true] %s201_s3 }
   0xb   :  { %131 = vmatpush.bf16.msra.mxu1 %v258_v9 }
   0xf   :  { %132 = vmatpush.bf16.msra.mxu1 %v257_v10 }
  0x13   :  { %133 = vmatpush.bf16.msra.mxu1 %v256_v11 }
  0x17   :  { %134 = vmatpush.bf16.msra.mxu1 %v255_v12 }
  0x1b   :  { %135 = vmatpush.bf16.msra.mxu1 %v254_v13 }
  0x1f   :  { %136 = vmatpush.bf16.msra.mxu1 %v253_v14 }
  0x85   :  { %v53_v15 = vpop.f32.mrf.mxu0 }
  0x86   :  { %v54_v17 = vadd.f32 %v264_v16, %v53_v15 }
  0x88   :  { %v58_v20 = vmax.f32 %v54_v17, 0.0 }
  0x8d   :  { %v55_v18 = vpop.f32.mrf.mxu0 }
  0x8e   :  { %v56_v19 = vadd.f32 %v264_v16, %v55_v18 }
  0x90   :  { %v59_v21 = vmax.f32 %v56_v19, 0.0 }
  0x92   :  { %v60_v22 = vpack.c.bf16 %v59_v21, %v58_v20 }
  0x94   :  { %137 = vmatmul.bf16.vlgmr.msra.gmra.mxu1 %v60_v22 }
 0x111   :  { %v138_v24 = vpop.f32.mrf.mxu1 }
 0x112   :  { %v139_v25 = vadd.f32 %v265_v23, %v138_v24 }
 0x114   :  { %v144_v26 = vsel %vm143_vm2, %v139_v25, -inf }
 0x115   :  { %145 = vmax.xlane.f32.xlu0 %v144_v26 }
 0x119   :  { %v140_v27 = vpop.f32.mrf.mxu1 }
 0x11a   :  { %v141_v28 = vadd.f32 %v265_v23, %v140_v27 }
 0x11c   :  { %v147_v29 = vsel %vm143_vm2, %v141_v28, -inf }
 0x11d   :  { %148 = vmax.xlane.f32.xlu0 %v147_v29 }
 0x188   :  { %v146_v30 = vpop.xlane.xlu0 %145 }
 0x189   :  { %v150_v31 = vsub.f32 %v139_v25, %v146_v30 }
 0x18b   :  { %v152_v32 = vmul.f32 1.442695, %v150_v31 }
 0x18d   :  { %266 = vpow2.f32 %v152_v32 }
 0x190   :  { %v149_v33 = vpop.xlane.xlu0 %148 }
 0x191   :  { %v151_v34 = vsub.f32 %v141_v28, %v149_v33 }
 0x193   :  { %v267_v35 = vpop.eup %266  ;;  %v154_v36 = vmul.f32 1.442695, %v151_v34 }
 0x194   :  { %v156_v37 = vsel %vm143_vm2, %v267_v35, 0.0 }
 0x195   :  { %268 = vpow2.f32 %v154_v36  ;;  %157 = vadd.xlane.f32.xlu1 %v156_v37 }
 0x19b   :  { %v269_v38 = vpop.eup %268 }
 0x19c   :  { %v159_v39 = vsel %vm143_vm2, %v269_v38, 0.0 }
 0x19d   :  { %160 = vadd.xlane.f32.xlu1 %v159_v39 }
 0x208   :  { %v158_v40 = vpop.xlane.xlu1 %157 }
 0x209   :  { %270 = vrcp.f32 %v158_v40  ;;  %v173_v45 = vand.u32 2147483648, %v158_v40  ;;  %v171_v47 = vand.u32 2147483647, %v158_v40  ;;  %vm167_vm4 = vweird.f32 %v158_v40 }
 0x20b   :  { %v174_v50 = vor.u32 1.1754944e-38, %v173_v45  ;;  %vm172_vm6 = vcmp.eq.f32.partialorder %v171_v47, 8.507059e+37 }
 0x20f   :  { %v271_v41 = vpop.eup %270 }
 0x210   :  { %v163_v42 = vmul.f32 %v271_v41, %v158_v40  ;;  %v161_v43 = vpop.xlane.xlu1 %160  ;;  %vm168_vm3 = vweird.f32 %v271_v41 }
 0x211   :  { %272 = vrcp.f32 %v161_v43  ;;  %vm169_vm5 = vmor %vm167_vm4, %vm168_vm3  ;;  %v188_v56 = vand.u32 2147483648, %v161_v43  ;;  %v186_v59 = vand.u32 2147483647, %v161_v43  ;;  %vm182_vm9 = vweird.f32 %v161_v43 }
 0x212   :  { %v164_v44 = vsub.f32 1.0, %v163_v42 }
 0x213   :  { %v189_v61 = vor.u32 1.1754944e-38, %v188_v56  ;;  %vm187_vm11 = vcmp.eq.f32.partialorder %v186_v59, 8.507059e+37 }
 0x214   :  { %v165_v46 = vmul.f32 %v271_v41, %v164_v44 }
 0x216   :  { %v166_v48 = vadd.f32 %v271_v41, %v165_v46 }
 0x217   :  { %v273_v49 = vpop.eup %272 }
 0x218   :  { %v170_v51 = vsel %vm169_vm5, %v271_v41, %v166_v48  ;;  %v178_v52 = vmul.f32 %v273_v49, %v161_v43  ;;  %vm183_vm8 = vweird.f32 %v273_v49 }
 0x219   :  { %v175_v53 = vsel %vm172_vm6, %v174_v50, %v170_v51  ;;  %vm184_vm10 = vmor %vm182_vm9, %vm183_vm8 }
 0x21a   :  { %v176_v54 = vmul.f32 %v267_v35, %v175_v53  ;;  %v179_v55 = vsub.f32 1.0, %v178_v52 }
 0x21c   :  { %v192_v57 = vpack.c.bf16 %v176_v54, %v176_v54  ;;  %v180_v58 = vmul.f32 %v273_v49, %v179_v55 }
 0x21e   :  { %v181_v60 = vadd.f32 %v273_v49, %v180_v58  ;;  %195 = vst.msk [vmem:[#allocation2] sm:$0xf] %vm194_vm7, %v192_v57 }
 0x220   :  { %v185_v62 = vsel %vm184_vm10, %v273_v49, %v181_v60 }
 0x221   :  { %v190_v63 = vsel %vm187_vm11, %v189_v61, %v185_v62 }
 0x222   :  { %v191_v0 = vmul.f32 %v269_v38, %v190_v63 }
 0x224   :  { %v193_v1 = vpack.c.bf16 %v191_v0, %v191_v0 }
 0x226   :  { %196 = vst.msk [vmem:[#allocation2 + $0x4] sm:$0xf] %vm194_vm7, %v193_v1 }
 0x227   :  { %209 = dma.vmem_to_hbm [thread:$0]  %s202_s3, 128, %s204_s20, [#allocation3], %s301_s21, %s301_s21, %s302_s22  }
 0x228   :  { %298 = dma.done.wait [#allocation3], 128  }
 0x229   :  { %299 = vsyncadd [#allocation3], 4294967168 }
 0x22a   :  { %214 = vsyncpa [#allocation3], 1 }

</bundles_post_ra>
